<compile_context>
chip_gen: v7x
topology: tpu7x:2x2x1
jax: 0.10.0
libtpu: 0.0.40
codegen_flags: <defaults>
</compile_context>

<pallas_src>
import jax
import jax.numpy as jnp
from jax.experimental import pallas as pl
from jax.experimental.pallas import tpu as pltpu


def _cdiv(a, b):
    return -(-a // b)


def _round_up(a, m):
    return _cdiv(a, m) * m


def _vmem_capacity_bytes():
    """Generation-aware VMEM capacity (128 MiB v5e/v6e, 64 MiB v7x per TC)."""
    try:
        return int(pltpu.get_tpu_info().vmem_capacity_bytes)
    except Exception:
        return 128 * 1024 * 1024


def _plan_tiling(B, T1, T2, itemsize, vmem_cap, batch_block=None, t1_block=None,
                 target_batch_steps=4):
    """Pick (batch_block, t1_block, num_t1_blocks) for the streaming reduce.

    * per-att block budget = VMEM/16  -> <=2 att inputs x 2 pipeline buffers
      stay under VMEM/4 on every generation.
    * batch tile capped so large batches give >= target_batch_steps grid steps
      (dual-TC sharding on v7x + DMA/compute overlap everywhere).
    * T1 is tiled (128-lane aligned) only when an 8-row batch slab of full rows
      would not fit the budget; the T2 max is never tiled (no max carry).
    """
    budget = max(1 << 20, vmem_cap // 16)
    per_row = max(1, T1 * T2 * itemsize)

    # ---- reduction (T1) axis ------------------------------------------------
    if t1_block is not None:
        t1_blk = min(int(t1_block), T1)
    elif B * per_row <= budget or 8 * per_row <= budget:
        t1_blk = T1                                   # full rows fit: no T1 tiling
    else:
        bb_probe = min(B, 8)
        t1_blk = (budget // max(1, bb_probe * T2 * itemsize)) // 128 * 128
        t1_blk = max(128, t1_blk)
        if t1_blk >= T1:
            t1_blk = T1
    num_t = _cdiv(T1, t1_blk)

    # ---- batch axis ---------------------------------------------------------
    if batch_block is not None:
        bb = min(int(batch_block), B)
    else:
        per_blk_row = max(1, t1_blk * T2 * itemsize)
        rows = max(1, budget // per_blk_row)
        cap = max(8, _round_up(_cdiv(B, target_batch_steps), 8))
        bb = min(rows, cap, B)
        if bb < B:
            bb = min(max(8, (bb // 8) * 8), B)        # sublane-aligned partial tiles
    return bb, t1_blk, num_t


def cross_layer_forward(att1, att2, y_score, rho_c, w, constr_on="1,2",
                        batch_block=None, t1_block=None):
    """JAX wrapper reproducing CrossLayer.forward with cross_constr='n3'.

    att1    : [B, T2, T1]  native layout (NOT pre-transposed; kernel handles it)
    att2    : [B, T1, T2]
    y_score : [B, NL]
    rho_c   : [1]          non-trainable rho (one per constraint layer)
    w       : [1, NL]      N3 label-direction weights (placeholder N3)

    Attention inputs may (and should, for bandwidth) be bfloat16: the max reduce
    runs in the input dtype and only the reduced row-max is upcast to f32.
    """
    flags = constr_on.split(",")
    on1 = "1" in flags
    on2 = "2" in flags
    if not (on1 or on2):
        # PyTorch would raise on torch.cat([]) — mirror that behavior explicitly.
        raise ValueError("constr_on must enable attention target '1' and/or '2'")

    B, T2, T1 = att1.shape
    assert att2.shape == (B, T1, T2), (att1.shape, att2.shape)
    NL = y_score.shape[-1]
    out_dtype = y_score.dtype
    n_branches = int(on1) + int(on2)

    itemsizes = []
    if on1:
        itemsizes.append(jnp.dtype(att1.dtype).itemsize)
    if on2:
        itemsizes.append(jnp.dtype(att2.dtype).itemsize)
    itemsize = max(itemsizes)

    vmem_cap = _vmem_capacity_bytes()
    bb, t1_blk, num_t = _plan_tiling(B, T1, T2, itemsize, vmem_cap,
                                     batch_block=batch_block, t1_block=t1_block)
    grid = (pl.cdiv(B, bb), num_t)
    needs_t1_mask = (num_t > 1) and (T1 % t1_blk != 0)

    # Only enabled branches are streamed through HBM -> VMEM.
    att_args, att_specs = [], []
    if on1:
        # att1 kept in native [B, T2, T1] layout: T1 is the lane dim of the block.
        att_args.append(att1)
        att_specs.append(pl.BlockSpec((bb, T2, t1_blk), lambda b, t: (b, 0, t)))
    if on2:
        att_args.append(att2)
        att_specs.append(pl.BlockSpec((bb, t1_blk, T2), lambda b, t: (b, t, 0)))
    n_att = len(att_args)

    def kernel(rho_ref, *refs):
        att_refs = refs[:n_att]
        y_ref, w_ref, out_ref, viol_ref = refs[n_att:]

        t = pl.program_id(1)

        @pl.when(t == 0)
        def _init():
            viol_ref[...] = jnp.zeros_like(viol_ref)

        mask = None
        if needs_t1_mask:
            lane = jax.lax.broadcasted_iota(jnp.int32, (bb, t1_blk), 1)
            mask = (t * t1_blk + lane) < T1

        idx = 0
        contrib = None
        if on1:
            # N3(att1^T): max over T2 == max over axis=1 of the native layout.
            # Max stays in the input dtype (exact in bf16); only the reduced
            # [bb, t1_blk] row-max is upcast; hinge + sum accumulate in f32.
            col_max = jnp.max(att_refs[idx][...], axis=1).astype(jnp.float32)
            idx += 1
            h = jnp.maximum(1.0 - col_max, 0.0)
            if mask is not None:
                h = jnp.where(mask, h, 0.0)
            contrib = h
        if on2:
            row_max = jnp.max(att_refs[idx][...], axis=-1).astype(jnp.float32)
            idx += 1
            h = jnp.maximum(1.0 - row_max, 0.0)
            if mask is not None:
                h = jnp.where(mask, h, 0.0)
            contrib = h if contrib is None else contrib + h

        viol_ref[...] += jnp.sum(contrib, axis=-1, keepdims=True)      # [bb, 1] f32

        @pl.when(t == pl.num_programs(1) - 1)
        def _finalize():
            rho = rho_ref[0]                                           # SMEM scalar
            y = y_ref[...].astype(jnp.float32)                         # [bb, NL]
            w_row = w_ref[...].astype(jnp.float32)                     # [1,  NL]
            # torch.cat(branches, 0).sum(0)
            #   == n_branches * y_score + rho * (v1 + v2) * w
            dy = (rho * viol_ref[...]) * w_row                         # [bb, NL]
            out_ref[...] = (jnp.float32(n_branches) * y + dy).astype(out_ref.dtype)

    # Advisory cost estimate: memory-bound custom call.
    att_bytes = n_att * B * T1 * T2 * itemsize
    io_bytes = (B * NL * jnp.dtype(y_score.dtype).itemsize
                + NL * jnp.dtype(w.dtype).itemsize
                + B * NL * jnp.dtype(out_dtype).itemsize
                + int(rho_c.size) * jnp.dtype(rho_c.dtype).itemsize)
    cost = pl.CostEstimate(
        flops=int(n_branches * B * T1 * T2 + 4 * B * NL),
        transcendentals=0,
        bytes_accessed=int(att_bytes + io_bytes),
    )

    # VMEM limit with correct per-generation headroom (~VMEM/2; never > 3/4).
    att_block_bytes = bb * t1_blk * T2 * itemsize
    pipelined_bytes = 2 * n_att * att_block_bytes           # double-buffered atts
    vmem_limit = int(min(3 * vmem_cap // 4,
                         max(vmem_cap // 2, pipelined_bytes + (8 << 20))))

    return pl.pallas_call(
        kernel,
        out_shape=jax.ShapeDtypeStruct((B, NL), out_dtype),
        grid=grid,
        in_specs=(
            [pl.BlockSpec(memory_space=pltpu.MemorySpace.SMEM)]        # rho_c
            + att_specs                                                # enabled atts
            + [pl.BlockSpec((bb, NL), lambda b, t: (b, 0)),            # y_score
               pl.BlockSpec((1, NL), lambda b, t: (0, 0))]             # w
        ),
        out_specs=pl.BlockSpec((bb, NL), lambda b, t: (b, 0)),
        scratch_shapes=[pltpu.VMEM((bb, 1), jnp.float32)],             # violation acc
        compiler_params=pltpu.CompilerParams(
            dimension_semantics=("parallel", "arbitrary"),   # batch sharded over TCs
            vmem_limit_bytes=vmem_limit,
        ),
        cost_estimate=cost,
    )(rho_c, *att_args, y_score, w)


def _reference_forward(att1, att2, y_score, rho_c, w, constr_on="1,2"):
    """Pure-JAX reference mirroring the PyTorch forward for validation."""
    att1t = jnp.swapaxes(att1, 1, 2)
    rho = rho_c[0]

    def n3(att):
        att = att.astype(jnp.float32)
        return jnp.sum(jnp.maximum(1.0 - jnp.max(att, axis=-1), 0.0),
                       axis=-1, keepdims=True)

    flags = constr_on.split(",")
    y = y_score.astype(jnp.float32)
    branches = []
    if "1" in flags:
        branches.append(y + rho * n3(att1t) * w)
    if "2" in flags:
        branches.append(y + rho * n3(att2) * w)
    return jnp.stack(branches, 0).sum(0).astype(y_score.dtype)


if __name__ == "__main__":
    key = jax.random.PRNGKey(0)
    k1, k2, k3, k4, k5, k6 = jax.random.split(key, 6)

    # --- Case 1: small NLI-style shapes, both branches enabled ---------------
    B, T1, T2, NL = 2, 8, 8, 3
    att1 = jax.nn.softmax(jax.random.normal(k1, (B, T2, T1), jnp.float32), axis=-1)
    att2 = jax.nn.softmax(jax.random.normal(k2, (B, T1, T2), jnp.float32), axis=-1)
    y_score = jax.random.normal(k3, (B, NL), jnp.float32)

    # Deterministic "parameters": rho_c (non-trainable, opt.rho_c='1.0') and the
    # placeholder N3 label-direction weights.
    rho_c = jnp.array([1.0], dtype=jnp.float32)
    w = jnp.array([[-1.0, 0.5, 0.5]], dtype=jnp.float32)

    out = jax.block_until_ready(
        cross_layer_forward(att1, att2, y_score, rho_c, w, constr_on="1,2"))
    ref = _reference_forward(att1, att2, y_score, rho_c, w, constr_on="1,2")
    assert out.shape == (B, NL)
    assert jnp.allclose(out, ref, atol=1e-5, rtol=1e-5)

    # Recommended bf16 attention storage: half the HBM bytes for this
    # bandwidth-bound kernel; max runs in bf16 (exact), hinge/sum in f32.
    att1_bf = att1.astype(jnp.bfloat16)
    att2_bf = att2.astype(jnp.bfloat16)
    out_bf = jax.block_until_ready(
        cross_layer_forward(att1_bf, att2_bf, y_score, rho_c, w, constr_on="1,2"))
    ref_bf = _reference_forward(att1_bf, att2_bf, y_score, rho_c, w, constr_on="1,2")
    assert jnp.allclose(out_bf, ref_bf, atol=1e-4, rtol=1e-4)

    # Single-branch path (only att2 constrained) — att1 is not DMA'd at all.
    out_1 = jax.block_until_ready(
        cross_layer_forward(att1, att2, y_score, rho_c, w, constr_on="2"))
    ref_1 = _reference_forward(att1, att2, y_score, rho_c, w, constr_on="2")
    assert jnp.allclose(out_1, ref_1, atol=1e-5, rtol=1e-5)

    # --- Case 2: force the multi-step grid (batch-tiled + T1-tiled fallback,
    # including a partial masked last T1 tile) at still-small shapes ----------
    B2, T1b, T2b = 16, 200, 128
    att1b = jax.nn.softmax(jax.random.normal(k4, (B2, T2b, T1b), jnp.float32), axis=-1)
    att2b = jax.nn.softmax(jax.random.normal(k5, (B2, T1b, T2b), jnp.float32), axis=-1)
    y_b = jax.random.normal(k6, (B2, NL), jnp.float32)

    out_b = jax.block_until_ready(
        cross_layer_forward(att1b, att2b, y_b, rho_c, w, constr_on="1,2",
                            batch_block=8, t1_block=128))
    ref_b = _reference_forward(att1b, att2b, y_b, rho_c, w, constr_on="1,2")
    assert jnp.allclose(out_b, ref_b, atol=1e-4, rtol=1e-4)

    print("KERNEL_OK")
</pallas_src>

<mosaic_0001>
module attributes {stable_mosaic.version = 11 : i64} {
  func.func @kernel(%arg0: i32, %arg1: i32, %arg2: memref<1xf32, #tpu.memory_space<smem>>, %arg3: memref<2x8x8xf32, #tpu.memory_space<vmem>>, %arg4: memref<2x8x8xf32, #tpu.memory_space<vmem>>, %arg5: memref<2x3xf32, #tpu.memory_space<vmem>>, %arg6: memref<1x3xf32, #tpu.memory_space<vmem>>, %arg7: memref<2x3xf32, #tpu.memory_space<vmem>>, %arg8: memref<2x1xf32, #tpu.memory_space<vmem>>) attributes {dimension_semantics = [#tpu.dimension_semantics<parallel>, #tpu.dimension_semantics<arbitrary>], iteration_bounds = array<i64: 1, 1>, scalar_prefetch = 0 : i64, scratch_operands = 1 : i64, tpu.core_type = #tpu.core_type<tc>, window_params = [{transform_indices = @transform_0, window_bounds = array<i64: 1>}, {transform_indices = @transform_1, window_bounds = array<i64: 2, 8, 8>}, {transform_indices = @transform_2, window_bounds = array<i64: 2, 8, 8>}, {transform_indices = @transform_3, window_bounds = array<i64: 2, 3>}, {pipeline_mode = #tpu.pipeline_mode<synchronous>, transform_indices = @transform_4, window_bounds = array<i64: 1, 3>}, {transform_indices = @transform_5, window_bounds = array<i64: 2, 3>}]} {
    %c0_i32 = arith.constant 0 : i32
    %0 = arith.cmpi eq, %arg1, %c0_i32 : i32
    %1 = arith.extui %0 : i1 to i32
    %c0_i32_0 = arith.constant 0 : i32
    %2 = arith.cmpi ne, %1, %c0_i32_0 : i32
    scf.if %2 {
      %cst_18 = arith.constant 0.000000e+00 : f32
      %24 = vector.broadcast %cst_18 : f32 to vector<2x1xf32>
      %c0_19 = arith.constant 0 : index
      %c0_20 = arith.constant 0 : index
      %25 = vector.load %arg8[%c0_19, %c0_20] : memref<2x1xf32, #tpu.memory_space<vmem>>, vector<2x1xf32>
      tpu.vector_store %arg8[%c0_19, %c0_20], %24 {strides = array<i32>} : memref<2x1xf32, #tpu.memory_space<vmem>>, vector<2x1xf32>,
    } else {
    }
    %c0 = arith.constant 0 : index
    %c0_1 = arith.constant 0 : index
    %c0_2 = arith.constant 0 : index
    %3 = vector.load %arg3[%c0, %c0_1, %c0_2] : memref<2x8x8xf32, #tpu.memory_space<vmem>>, vector<2x8x8xf32>
    %cst = arith.constant dense<0xFF800000> : vector<2x8xf32>
    %4 = vector.multi_reduction <maximumf>, %3, %cst [1] : vector<2x8x8xf32> to vector<2x8xf32>
    %cst_3 = arith.constant 1.000000e+00 : f32
    %5 = vector.broadcast %cst_3 : f32 to vector<2x8xf32>
    %6 = arith.subf %5, %4 : vector<2x8xf32>
    %cst_4 = arith.constant 0.000000e+00 : f32
    %7 = vector.broadcast %cst_4 : f32 to vector<2x8xf32>
    %8 = arith.maximumf %6, %7 : vector<2x8xf32>
    %c0_5 = arith.constant 0 : index
    %c0_6 = arith.constant 0 : index
    %c0_7 = arith.constant 0 : index
    %9 = vector.load %arg4[%c0_5, %c0_6, %c0_7] : memref<2x8x8xf32, #tpu.memory_space<vmem>>, vector<2x8x8xf32>
    %cst_8 = arith.constant dense<0xFF800000> : vector<2x8xf32>
    %10 = vector.multi_reduction <maximumf>, %9, %cst_8 [2] : vector<2x8x8xf32> to vector<2x8xf32>
    %cst_9 = arith.constant 1.000000e+00 : f32
    %11 = vector.broadcast %cst_9 : f32 to vector<2x8xf32>
    %12 = arith.subf %11, %10 : vector<2x8xf32>
    %cst_10 = arith.constant 0.000000e+00 : f32
    %13 = vector.broadcast %cst_10 : f32 to vector<2x8xf32>
    %14 = arith.maximumf %12, %13 : vector<2x8xf32>
    %15 = arith.addf %8, %14 : vector<2x8xf32>
    %c0_11 = arith.constant 0 : index
    %c0_12 = arith.constant 0 : index
    %16 = vector.load %arg8[%c0_11, %c0_12] : memref<2x1xf32, #tpu.memory_space<vmem>>, vector<2x1xf32>
    %cst_13 = arith.constant dense<0.000000e+00> : vector<2xf32>
    %17 = vector.multi_reduction <add>, %15, %cst_13 [1] : vector<2x8xf32> to vector<2xf32>
    %18 = vector.shape_cast %17 : vector<2xf32> to vector<2x1xf32>
    %19 = arith.addf %16, %18 : vector<2x1xf32>
    %c0_14 = arith.constant 0 : index
    %c0_15 = arith.constant 0 : index
    %20 = vector.load %arg8[%c0_14, %c0_15] : memref<2x1xf32, #tpu.memory_space<vmem>>, vector<2x1xf32>
    tpu.vector_store %arg8[%c0_14, %c0_15], %19 {strides = array<i32>} : memref<2x1xf32, #tpu.memory_space<vmem>>, vector<2x1xf32>,
    %c0_i32_16 = arith.constant 0 : i32
    %21 = arith.cmpi eq, %arg1, %c0_i32_16 : i32
    %22 = arith.extui %21 : i1 to i32
    %c0_i32_17 = arith.constant 0 : i32
    %23 = arith.cmpi ne, %22, %c0_i32_17 : i32
    scf.if %23 {
      %c0_18 = arith.constant 0 : index
      %24 = memref.load %arg2[%c0_18] : memref<1xf32, #tpu.memory_space<smem>>
      %c0_19 = arith.constant 0 : index
      %c0_20 = arith.constant 0 : index
      %25 = vector.load %arg5[%c0_19, %c0_20] : memref<2x3xf32, #tpu.memory_space<vmem>>, vector<2x3xf32>
      %c0_21 = arith.constant 0 : index
      %c0_22 = arith.constant 0 : index
      %26 = vector.load %arg6[%c0_21, %c0_22] : memref<1x3xf32, #tpu.memory_space<vmem>>, vector<1x3xf32>
      %c0_23 = arith.constant 0 : index
      %c0_24 = arith.constant 0 : index
      %27 = vector.load %arg8[%c0_23, %c0_24] : memref<2x1xf32, #tpu.memory_space<vmem>>, vector<2x1xf32>
      %28 = vector.broadcast %24 : f32 to vector<2x1xf32>
      %29 = arith.mulf %28, %27 : vector<2x1xf32>
      %30 = vector.broadcast %29 : vector<2x1xf32> to vector<2x3xf32>
      %31 = vector.broadcast %26 : vector<1x3xf32> to vector<2x3xf32>
      %32 = arith.mulf %30, %31 : vector<2x3xf32>
      %cst_25 = arith.constant 2.000000e+00 : f32
      %33 = vector.broadcast %cst_25 : f32 to vector<2x3xf32>
      %34 = arith.mulf %33, %25 : vector<2x3xf32>
      %35 = arith.addf %34, %32 : vector<2x3xf32>
      %c0_26 = arith.constant 0 : index
      %c0_27 = arith.constant 0 : index
      %36 = vector.load %arg7[%c0_26, %c0_27] : memref<2x3xf32, #tpu.memory_space<vmem>>, vector<2x3xf32>
      tpu.vector_store %arg7[%c0_26, %c0_27], %35 {strides = array<i32>} : memref<2x3xf32, #tpu.memory_space<vmem>>, vector<2x3xf32>,
    } else {
    }
    return
  }
  func.func @transform_0(%arg0: i32, %arg1: i32) -> i32 {
    %c0_i32 = arith.constant 0 : i32
    %c0_i32_0 = arith.constant 0 : i32
    return %c0_i32 : i32
  }
  func.func @transform_1(%arg0: i32, %arg1: i32) -> (i32, i32, i32) {
    %c0_i32 = arith.constant 0 : i32
    %c0_i32_0 = arith.constant 0 : i32
    return %arg0, %c0_i32, %arg1 : i32, i32, i32
  }
  func.func @transform_2(%arg0: i32, %arg1: i32) -> (i32, i32, i32) {
    %c0_i32 = arith.constant 0 : i32
    %c0_i32_0 = arith.constant 0 : i32
    return %arg0, %arg1, %c0_i32 : i32, i32, i32
  }
  func.func @transform_3(%arg0: i32, %arg1: i32) -> (i32, i32) {
    %c0_i32 = arith.constant 0 : i32
    %c0_i32_0 = arith.constant 0 : i32
    return %arg0, %c0_i32 : i32, i32
  }
  func.func @transform_4(%arg0: i32, %arg1: i32) -> (i32, i32) {
    %c0_i32 = arith.constant 0 : i32
    %c0_i32_0 = arith.constant 0 : i32
    %c0_i32_1 = arith.constant 0 : i32
    return %c0_i32, %c0_i32_0 : i32, i32
  }
  func.func @transform_5(%arg0: i32, %arg1: i32) -> (i32, i32) {
    %c0_i32 = arith.constant 0 : i32
    %c0_i32_0 = arith.constant 0 : i32
    return %arg0, %c0_i32 : i32, i32
  }
}

</mosaic_0001>

<bundles_post_ra>
// kernel: tpu_custom_call.1
= control target key start
LH: loop header
LB: loop body
LE: loop exit
PB: predicated region body
PF: predicated region fallthrough
CT: control target
= control target key end

     0   :  { %11 = vsyncpa [#allocation5], 0  ;;  %s425_s0 = inlined_call_operand.<no memory space> [shape: f32[1], index: 0, kind: input, shape index: {}]   ;;  %s426_s1 = inlined_call_operand.hbm [shape: f32[2,8,8], index: 1, kind: input, shape index: {}]   ;;  %s427_s2 = inlined_call_operand.hbm [shape: f32[2,8,8], index: 2, kind: input, shape index: {}]   ;;  %s428_s3 = inlined_call_operand.hbm [shape: f32[2,3], index: 3, kind: input, shape index: {}]   ;;  %s429_s4 = inlined_call_operand.hbm [shape: f32[1,3], index: 4, kind: input, shape index: {}]   ;;  %s430_s5 = inlined_call_operand.hbm [shape: f32[2,3], index: 5, kind: output, shape index: {}]  }
   0x1   :  { %12 = vsyncpa [#allocation8], 0 }
   0x2   :  { %13 = vsyncpa [#allocation11], 0 }
   0x3   :  { %14 = vsyncpa [#allocation6], 0  ;;  %s314_s18 = smov [#allocation7]   ;;  %s315_s20 = smov [#allocation4]  }
   0x4   :  { %s34_s19 = sshll.u32 %s314_s18, 4  ;;  %s22_s21 = sshll.u32 %s315_s20, 4  ;;  %s35_s19 = int_to_ptr.vmem [resolvable:$true] %s34_s19  ;;  %s353_s21 = int_to_ptr.vmem [resolvable:$true] %s22_s21 }
   0x5   :  { %s196_s24 = scalar_lea.hbm %s427_s2, 256 }
   0x6   :  { %p197_p0 = scmp.ne.s32.totalorder %s427_s2, %s196_s24  ;;  %p200_p1 = scmp.lt.u32.totalorder %s196_s24, %s427_s2 }
   0x8   :  { %p202_p2 = pnand %p200_p1, %p197_p0 }
   0xa   :  { %205 = shalt.err (!%p202_p2)
}
   0xb   :  { %s206_s29 = scalar_lea.vmem %s35_s19, 256  ;;  %p211_p4 = scmp.lt.s32.totalorder %s35_s19, %s35_s19 }
   0xc   :  { %p207_p3 = scmp.ne.s32.totalorder %s35_s19, %s206_s29  ;;  %p212_p5 = scmp.lt.s32.totalorder %s206_s29, %s206_s29 }
   0xe   :  { %p213_p6 = por %p212_p5, %p211_p4 }
  0x10   :  { %p214_p7 = pnand %p213_p6, %p207_p3 }
  0x12   :  { %217 = shalt.err (!%p214_p7)
}
  0x13   :  { %s316_s30 = smov 128   ;;  %s317_s6 = smov 8  }
  0x14   :  { %40 = dma.hbm_to_vmem [thread:$0]  %s427_s2, 256, %s35_s19, [#allocation8], %s316_s30, %s316_s30, %s317_s6  }
  0x15   :  { %s218_s11 = scalar_lea.hbm %s426_s1, 256 }
  0x16   :  { %p219_p8 = scmp.ne.s32.totalorder %s426_s1, %s218_s11  ;;  %p222_p9 = scmp.lt.u32.totalorder %s218_s11, %s426_s1 }
  0x18   :  { %p224_p10 = pnand %p222_p9, %p219_p8 }
  0x1a   :  { %227 = shalt.err (!%p224_p10)
}
  0x1b   :  { %s228_s16 = scalar_lea.vmem %s353_s21, 256  ;;  %p233_p12 = scmp.lt.s32.totalorder %s353_s21, %s353_s21 }
  0x1c   :  { %p229_p11 = scmp.ne.s32.totalorder %s353_s21, %s228_s16  ;;  %p234_p13 = scmp.lt.s32.totalorder %s228_s16, %s228_s16 }
  0x1e   :  { %p235_p0 = por %p234_p13, %p233_p12 }
  0x20   :  { %p236_p1 = pnand %p235_p0, %p229_p11 }
  0x22   :  { %239 = shalt.err (!%p236_p1)
}
  0x23   :  { %28 = dma.hbm_to_vmem [thread:$0]  %s426_s1, 256, %s353_s21, [#allocation5], %s316_s30, %s316_s30, %s317_s6  }
  0x24   :  { %s318_s18 = smov [#allocation9]   ;;  %s319_s20 = smov [#allocation10]  }
  0x25   :  { %s47_s19 = sshll.u32 %s318_s18, 4  ;;  %s57_s22 = sshll.u32 %s319_s20, 4  ;;  %s48_s19 = int_to_ptr.vmem [resolvable:$true] %s47_s19  ;;  %s58_s22 = int_to_ptr.vmem [resolvable:$true] %s57_s22 }
  0x26   :  { %s240_s25 = scalar_lea.hbm %s428_s3, 32 }
  0x27   :  { %p241_p2 = scmp.ne.s32.totalorder %s428_s3, %s240_s25  ;;  %p244_p3 = scmp.lt.u32.totalorder %s240_s25, %s428_s3 }
  0x29   :  { %p246_p4 = pnand %p244_p3, %p241_p2 }
  0x2b   :  { %249 = shalt.err (!%p246_p4)
}
  0x2c   :  { %s250_s1 = scalar_lea.vmem %s48_s19, 32  ;;  %p255_p6 = scmp.lt.s32.totalorder %s48_s19, %s48_s19 }
  0x2d   :  { %p251_p5 = scmp.ne.s32.totalorder %s48_s19, %s250_s1  ;;  %p256_p7 = scmp.lt.s32.totalorder %s250_s1, %s250_s1 }
  0x2f   :  { %p257_p8 = por %p256_p7, %p255_p6 }
  0x31   :  { %p258_p9 = pnand %p257_p8, %p251_p5 }
  0x33   :  { %261 = shalt.err (!%p258_p9)
}
  0x34   :  { %50 = dma.hbm_to_vmem [thread:$0]  %s428_s3, 32, %s48_s19, [#allocation8]  }
  0x35   :  { %s262_s8 = scalar_lea.hbm %s429_s4, 16 }
  0x36   :  { %p263_p10 = scmp.ne.s32.totalorder %s429_s4, %s262_s8  ;;  %p266_p11 = scmp.lt.u32.totalorder %s262_s8, %s429_s4 }
  0x38   :  { %p268_p12 = pnand %p266_p11, %p263_p10 }
  0x3a   :  { %271 = shalt.err (!%p268_p12)
}
  0x3b   :  { %s272_s13 = scalar_lea.vmem %s58_s22, 16  ;;  %s276_s14 = scalar_lea.vmem %s58_s22, 32 }
  0x3c   :  { %p273_p13 = scmp.ne.s32.totalorder %s58_s22, %s272_s13  ;;  %p277_p0 = scmp.lt.s32.totalorder %s58_s22, %s58_s22 }
  0x3d   :  { %p278_p1 = scmp.lt.s32.totalorder %s276_s14, %s272_s13 }
  0x3f   :  { %p279_p2 = por %p278_p1, %p277_p0 }
  0x41   :  { %p280_p3 = pnand %p279_p2, %p273_p13 }
  0x43   :  { %283 = shalt.err (!%p280_p3)
}
  0x44   :  { %60 = dma.hbm_to_vmem [thread:$0]  %s429_s4, 16, %s58_s22, [#allocation11]  }
  0x45   :  { %306 = dma.done.wait [#allocation5], 256  }
  0x46   :  { %307 = vsyncadd [#allocation5], 4294967040 }
  0x47   :  { %308 = dma.done.wait [#allocation8], 288  }
  0x48   :  { %309 = vsyncadd [#allocation8], 4294967008 }
  0x49   :  { %310 = dma.done.wait [#allocation11], 16  }
  0x4a   :  { %311 = vsyncadd [#allocation11], 4294967280  ;;  %vm81_vm0 = vcmask 64512   ;;  %v101_v0 = vld [vmem:[#allocation7 + $0x8] sm:$0xff]  ;;  %v100_v2 = vld [vmem:[#allocation7] sm:$0xff]  ;;  %vm77_vm1 = vcmask 1024   ;;  %v114_v18 = vlaneseq  ;;  %v149_v46 = vstv %s425_s0 }
  0x4b   :  { %v105_v1 = vsel %vm81_vm0, %v101_v0, -inf  ;;  %v102_v3 = vsel %vm81_vm0, %v100_v2, -inf  ;;  %v320_v4 = vmov 0.0   ;;  %v80_v5 = vld [vmem:[#allocation4 + $0x8] sm:$0xff]  ;;  %v79_v7 = vld [vmem:[#allocation4] sm:$0xff]  ;;  %vm132_vm2 = vcmask 1041409  }
  0x4c   :  { %106 = vmax.xlane.f32.xlu0 %v105_v1  ;;  %78 = vst.msk [vmem:[#allocation2] sm:$0x3] %vm77_vm1, %v320_v4  ;;  %v89_v6 = vsel %vm81_vm0, %v80_v5, -inf  ;;  %v82_v9 = vsel %vm81_vm0, %v79_v7, -inf  ;;  %v115_v21 = vand.u32 127, %v114_v18  ;;  %v117_v22 = vshrl.u32 %v114_v18, 7 }
  0x4d   :  { %v90_v8 = vrot.slane %v89_v6, 4  ;;  %v83_v10 = vrot.slane %v82_v9, 4  ;;  %vm135_vm3 = vcmask 58368   ;;  %v321_v42 = vmov 0   ;;  %v146_v49 = vld [vmem:[#allocation9] sm:$0x3] }
  0x4e   :  { %v118_v26 = vsub.s32 %v115_v21, %v117_v22  ;;  %194 = vset.pattern.permute.xlu1 %v321_v42  ;;  %195 = vset.pattern.permute.xlu0 %v321_v42  ;;  %v184_v50 = vld [vmem:[#allocation10] ss:$0 sm:$0xff]  ;;  %v163_v51 = vmul.f32 2.0, %v146_v49  ;;  %s322_s2 = smov [#allocation12]   ;;  %vm165_vm4 = vcmask 17408  }
  0x4f   :  { %v91_v11 = vmax.f32 %v89_v6, %v90_v8  ;;  %v84_v12 = vmax.f32 %v82_v9, %v83_v10  ;;  %s173_s17 = sshll.u32 %s322_s2, 4  ;;  %s174_s17 = int_to_ptr.vmem [resolvable:$true] %s173_s17 }
  0x50   :  { %103 = vmax.xlane.f32.xlu0 %v102_v3  ;;  %s284_s18 = scalar_lea.vmem %s174_s17, 32  ;;  %p289_p5 = scmp.lt.s32.totalorder %s174_s17, %s174_s17 }
  0x51   :  { %v92_v13 = vrot.slane %v91_v11, 2  ;;  %v85_v14 = vrot.slane %v84_v12, 2  ;;  %p285_p4 = scmp.ne.s32.totalorder %s174_s17, %s284_s18  ;;  %p290_p6 = scmp.lt.s32.totalorder %s284_s18, %s284_s18 }
  0x53   :  { %v93_v15 = vmax.f32 %v91_v11, %v92_v13  ;;  %v86_v17 = vmax.f32 %v84_v12, %v85_v14  ;;  %v128_v43 = vld [vmem:[#allocation2] sm:$0x3]  ;;  %p291_p7 = por %p290_p6, %p289_p5 }
  0x55   :  { %v94_v16 = vrot.slane %v93_v15, 1  ;;  %v87_v20 = vrot.slane %v86_v17, 1  ;;  %p292_p8 = pnand %p291_p7, %p285_p4 }
  0x57   :  { %v95_v19 = vmax.f32 %v93_v15, %v94_v16  ;;  %v88_v24 = vmax.f32 %v86_v17, %v87_v20 }
  0x59   :  { %v97_v23 = vsub.f32 1.0, %v95_v19  ;;  %v96_v30 = vsub.f32 1.0, %v88_v24 }
  0x5b   :  { %v99_v28 = vmax.f32 %v97_v23, 0.0  ;;  %v98_v35 = vmax.f32 %v96_v30, 0.0 }
  0xd9   :  { %v107_v25 = vpop.xlane.xlu0 %106 }
  0xda   :  { %v109_v27 = vsub.f32 1.0, %v107_v25 }
  0xdc   :  { %v111_v29 = vmax.f32 %v109_v27, 0.0 }
  0xdd   :  { %v104_v31 = vpop.xlane.xlu0 %103 }
  0xde   :  { %v123_v32 = vrot.slane %v111_v29, %v118_v26  ;;  %v108_v33 = vsub.f32 1.0, %v104_v31 }
  0xe0   :  { %v127_v34 = vadd.f32 %v123_v32, %v99_v28  ;;  %v110_v36 = vmax.f32 %v108_v33, 0.0 }
  0xe2   :  { %v119_v37 = vrot.slane %v110_v36, %v118_v26  ;;  %v131_v39 = vrot.slane %v127_v34, 7 }
  0xe4   :  { %v126_v38 = vadd.f32 %v119_v37, %v98_v35 }
  0xe6   :  { %v133_v40 = vsel %vm132_vm2, %v131_v39, %v126_v38 }
  0xe7   :  { %v136_v41 = vsel %vm135_vm3, %v133_v40, 0.0 }
  0xe8   :  { %137 = vadd.xlane.f32.xlu1 %v136_v41 }
 0x175   :  { %v138_v44 = vpop.xlane.xlu1 %137 }
 0x176   :  { %v139_v45 = vadd.f32 %v138_v44, %v128_v43 }
 0x178   :  { %141 = vst.msk [vmem:[#allocation2] sm:$0x3] %vm77_vm1, %v139_v45 }
 0x17f   :  { %v148_v47 = vld [vmem:[#allocation2] sm:$0x3] }
 0x180   :  { %v150_v48 = vmul.f32 %v149_v46, %v148_v47 }
 0x182   :  { %153 = vperm.xlu1 %194, %v150_v48  }
 0x201   :  { %v154_v52 = vpop.permute.xlu1 %153 }
 0x202   :  { %v162_v53 = vmul.f32 %v184_v50, %v154_v52 }
 0x204   :  { %v164_v54 = vadd.f32 %v163_v51, %v162_v53 }
 0x206   :  { %166 = vst.msk [vmem:[#allocation12] sm:$0x3] %vm165_vm4, %v164_v54 }
 0x207   :  { %295 = shalt.err (!%p292_p8)
}
 0x208   :  { %s296_s20 = scalar_lea.hbm %s430_s5, 32 }
 0x209   :  { %p297_p9 = scmp.ne.s32.totalorder %s430_s5, %s296_s20  ;;  %p300_p10 = scmp.lt.u32.totalorder %s296_s20, %s430_s5 }
 0x20b   :  { %p302_p11 = pnand %p300_p10, %p297_p9 }
 0x20d   :  { %305 = shalt.err (!%p302_p11)
}
 0x20e   :  { %176 = dma.vmem_to_hbm [thread:$0]  %s174_s17, 32, %s430_s5, [#allocation6]  }
 0x20f   :  { %312 = dma.done.wait [#allocation6], 32  }
 0x210   :  { %313 = vsyncadd [#allocation6], 4294967264 }
 0x211   :  { %180 = vsyncpa [#allocation5], 1 }
 0x212   :  { %181 = vsyncpa [#allocation8], 1 }
 0x213   :  { %182 = vsyncpa [#allocation11], 1 }
 0x214   :  { %183 = vsyncpa [#allocation6], 1 }

</bundles_post_ra>
